<compile_context>
chip_gen: v7x
topology: tpu7x:2x2x1
jax: 0.10.0
libtpu: 0.0.40
codegen_flags: <defaults>
</compile_context>

<pallas_src>
import math

import jax
import jax.numpy as jnp
from jax.experimental import pallas as pl
from jax.experimental.pallas import tpu as pltpu

BN_EPS = 1e-5
HIGH = jax.lax.Precision.HIGHEST


# --------------------------------------------------------------------------- #
# Pallas kernel: blocked dual-gemv over the two adjacencies.
# --------------------------------------------------------------------------- #
def _agg_kernel(c_ref, z_ref, adjb_ref, adjf_ref, out_ref):
    """out[0, j-tile] = z_b @ A_body[:, j-tile] + z_f @ A_face[:, j-tile] + c."""
    k = pl.program_id(1)

    @pl.when(k == 0)
    def _():
        # Initialize the fp32 accumulator (the revisited output block) with
        # the folded scalar bias c, so no finalize step is needed.
        out_ref[...] = jnp.zeros_like(out_ref) + c_ref[0]

    # z is fp32 in HBM; casting only the (2, tile_k) slice per step is
    # negligible and keeps the MXU on the native bf16 x bf16 path.
    z = z_ref[...].astype(adjb_ref.dtype)                          # [2, tile_k]
    out_ref[...] += (
        jnp.dot(z[0:1, :], adjb_ref[...], preferred_element_type=jnp.float32)
        + jnp.dot(z[1:2, :], adjf_ref[...], preferred_element_type=jnp.float32))


# --------------------------------------------------------------------------- #
# Host-side helpers.
# --------------------------------------------------------------------------- #
def _round_up(x, m):
    return ((x + m - 1) // m) * m


def _tile_plan(n, tile_n, tile_k):
    """128-aligned tiles and a padded size divisible by both tiles."""
    assert tile_n % 128 == 0 and tile_k % 128 == 0
    n128 = _round_up(n, 128)
    tile_n = min(tile_n, n128)
    tile_k = min(tile_k, n128)
    n_pad = _round_up(n, math.lcm(tile_n, tile_k))
    return n_pad, tile_n, tile_k


def prepare_adjacency(adj, n_pad, dtype=jnp.bfloat16):
    """One-time cast + zero-pad of a dense normalized adjacency.

    Hoist this out of the hot path when calling the forward repeatedly: if the
    input already has the target dtype and padded shape it is returned as-is
    (no extra N^2 HBM traffic).
    """
    n = adj.shape[0]
    assert n <= n_pad
    if adj.dtype == dtype and n == n_pad:
        return adj
    out = jnp.zeros((n_pad, n_pad), dtype)
    return out.at[:n, :n].set(adj.astype(dtype))


def gcn_body_gcn_face_forward(x, adj_body, adj_face, params, *,
                              tile_n=512, tile_k=512,
                              adj_dtype=jnp.bfloat16):
    """Fused SEF forward.

    adj_* must be dense SYMMETRIC normalized adjacencies; they may optionally
    be pre-processed with `prepare_adjacency` (padded + cast) to avoid any
    per-call N^2 copies.
    """
    (w1, b1, gamma, beta, mean, var, prelu_a,
     w2, b2, wg_b, bg_b, wb_w, wb_b, wg_f, bg_f, wf_w, wf_b) = params

    n = x.shape[0]
    n_pad, tile_n, tile_k = _tile_plan(n, tile_n, tile_k)

    # ---- encoder (eval-mode BatchNorm folded into Linear(2,32)) — O(N*32^2),
    #      plain XLA; negligible next to the O(N^2) aggregation ----
    s = gamma / jnp.sqrt(var + BN_EPS)                          # [32]
    h = jnp.dot(x.astype(jnp.float32), w1 * s[None, :], precision=HIGH)
    h = h + (b1 * s + beta - mean * s)
    h = jnp.where(h > 0, h, prelu_a * h)                        # PReLU; Dropout(p=0)=id
    emb = jnp.dot(h, w2, precision=HIGH) + b2                   # [N, 32]

    # ---- exact fold of GCNConv + Linear(32,1) head (no nonlinearity between,
    #      eval mode): v = Wg @ w_head ([32]), c = bg @ w_head + b_head ----
    v_b = jnp.dot(wg_b, wb_w, precision=HIGH)[:, 0]             # [32]
    v_f = jnp.dot(wg_f, wf_w, precision=HIGH)[:, 0]             # [32]
    c = (jnp.dot(bg_b, wb_w, precision=HIGH)[0] + wb_b
         + jnp.dot(bg_f, wf_w, precision=HIGH)[0] + wf_b)       # scalar
    c = jnp.asarray(c, jnp.float32).reshape((1,))

    # z rows: z_b / z_f with nodes on lanes; explicitly zeroed at padded
    # positions so tail correctness does not rely on adjacency padding.
    z = jnp.zeros((2, n_pad), jnp.float32)
    z = z.at[0, :n].set(jnp.dot(emb, v_b, precision=HIGH))
    z = z.at[1, :n].set(jnp.dot(emb, v_f, precision=HIGH))

    # ---- one-time adjacency prep (no-op if already padded + adj_dtype) ----
    adj_b = prepare_adjacency(adj_body, n_pad, adj_dtype)
    adj_f = prepare_adjacency(adj_face, n_pad, adj_dtype)

    # 2 adjacencies x double-buffering x block bytes, plus small slack; raise
    # v5e's 16 MiB scoped default, stay well under v7x's 64 MiB physical VMEM.
    adj_block_bytes = tile_k * tile_n * jnp.dtype(adj_dtype).itemsize
    vmem_limit = int(min(48 * 2**20, max(32 * 2**20, 8 * adj_block_bytes)))

    out = pl.pallas_call(
        _agg_kernel,
        out_shape=jax.ShapeDtypeStruct((1, n_pad), jnp.float32),
        grid=(n_pad // tile_n, n_pad // tile_k),
        in_specs=[
            pl.BlockSpec(memory_space=pltpu.MemorySpace.SMEM),        # c (scalar)
            pl.BlockSpec((2, tile_k), lambda j, k: (0, k)),           # z
            pl.BlockSpec((tile_k, tile_n), lambda j, k: (k, j)),      # A_body block
            pl.BlockSpec((tile_k, tile_n), lambda j, k: (k, j)),      # A_face block
        ],
        out_specs=pl.BlockSpec((1, tile_n), lambda j, k: (0, j)),     # lane-dense
        compiler_params=pltpu.CompilerParams(
            # j (output tiles) is fully independent -> "parallel" (v7x megacore
            # sharding); k (reduction) revisits the output block -> "arbitrary".
            dimension_semantics=("parallel", "arbitrary"),
            vmem_limit_bytes=vmem_limit),
    )(c, z, adj_b, adj_f)
    return out[0, :n]                                                 # .squeeze() -> [N]


# --------------------------------------------------------------------------- #
# Pure-JAX reference, parameter / data construction, self-test.
# --------------------------------------------------------------------------- #
def _reference_forward(x, adj_body, adj_face, params):
    """Straightforward pure-JAX forward (eval mode), for verification."""
    (w1, b1, gamma, beta, mean, var, prelu_a,
     w2, b2, wg_b, bg_b, wb_w, wb_b, wg_f, bg_f, wf_w, wf_b) = params
    h = jnp.dot(x, w1, precision=HIGH) + b1
    h = (h - mean) / jnp.sqrt(var + BN_EPS) * gamma + beta
    h = jnp.where(h > 0, h, prelu_a * h)
    emb = jnp.dot(h, w2, precision=HIGH) + b2
    gcn_b = jnp.dot(jnp.dot(adj_body, emb, precision=HIGH), wg_b, precision=HIGH) + bg_b
    gcn_f = jnp.dot(jnp.dot(adj_face, emb, precision=HIGH), wg_f, precision=HIGH) + bg_f
    body_scores = jnp.dot(gcn_b, wb_w, precision=HIGH)[:, 0] + wb_b
    face_scores = jnp.dot(gcn_f, wf_w, precision=HIGH)[:, 0] + wf_b
    return body_scores + face_scores


def init_params(key):
    """Deterministic parameters matching the module's shapes (eval mode)."""
    ks = jax.random.split(key, 7)

    def linear(k, fan_in, fan_out):
        bound = 1.0 / float(fan_in) ** 0.5
        kw, kb = jax.random.split(k)
        w = jax.random.uniform(kw, (fan_in, fan_out), jnp.float32, -bound, bound)
        b = jax.random.uniform(kb, (fan_out,), jnp.float32, -bound, bound)
        return w, b

    w1, b1 = linear(ks[0], 2, 32)          # encoder[0]: Linear(2, 32)
    w2, b2 = linear(ks[1], 32, 32)         # encoder[4]: Linear(32, 32)
    wg_b, bg_b = linear(ks[2], 32, 32)     # gcn_body weight / bias
    wg_f, bg_f = linear(ks[3], 32, 32)     # gcn_face weight / bias
    wb_w, wb_bv = linear(ks[4], 32, 1)     # w_b
    wf_w, wf_bv = linear(ks[5], 32, 1)     # w_f

    kg, kb_, km, kv = jax.random.split(ks[6], 4)          # BatchNorm1d(32) eval stats
    gamma = jax.random.uniform(kg, (32,), jnp.float32, 0.5, 1.5)
    beta = 0.1 * jax.random.normal(kb_, (32,), jnp.float32)
    mean = 0.1 * jax.random.normal(km, (32,), jnp.float32)
    var = jax.random.uniform(kv, (32,), jnp.float32, 0.5, 1.5)
    prelu_a = jnp.asarray(0.25, jnp.float32)               # PReLU default slope

    return (w1, b1, gamma, beta, mean, var, prelu_a,
            w2, b2, wg_b, bg_b, wb_w, wb_bv[0], wg_f, bg_f, wf_w, wf_bv[0])


def build_normalized_adjacency(key, n, p):
    """Random undirected graph -> D^-1/2 (A + I) D^-1/2 (symmetric)."""
    a = (jax.random.uniform(key, (n, n)) < p).astype(jnp.float32)
    a = jnp.maximum(a, a.T)
    a = a * (1.0 - jnp.eye(n)) + jnp.eye(n)                 # add self loops
    d_inv_sqrt = 1.0 / jnp.sqrt(jnp.sum(a, axis=1))
    return a * d_inv_sqrt[:, None] * d_inv_sqrt[None, :]


if __name__ == "__main__":
    key = jax.random.PRNGKey(0)
    k_x, k_ab, k_af, k_p = jax.random.split(key, 4)

    N = 200                                                  # number of graph nodes
    x = jax.random.normal(k_x, (N, 2), jnp.float32)          # graph.x node features
    adj_body = build_normalized_adjacency(k_ab, N, 0.25)     # graph_body adjacency
    adj_face = build_normalized_adjacency(k_af, N, 0.10)     # graph_face adjacency
    params = init_params(k_p)

    scores = gcn_body_gcn_face_forward(x, adj_body, adj_face, params)
    jax.block_until_ready(scores)
    assert scores.shape == (N,)

    # Structural self-check against a plain-JAX fp32 reference (tolerance is
    # loose to allow for the bf16 adjacency streaming / reassociation).
    ref = _reference_forward(x, adj_body, adj_face, params)
    err = float(jnp.max(jnp.abs(scores - ref)))
    scale = float(jnp.max(jnp.abs(ref))) + 1.0
    assert err < 5e-2 * scale, f"kernel/reference mismatch: {err}"

    print("KERNEL_OK")
</pallas_src>

<mosaic_0001>
module attributes {stable_mosaic.version = 11 : i64} {
  func.func @_agg_kernel(%arg0: i32, %arg1: i32, %arg2: memref<1xf32, #tpu.memory_space<smem>>, %arg3: memref<2x256xf32, #tpu.memory_space<vmem>>, %arg4: memref<256x256xbf16, #tpu.memory_space<vmem>>, %arg5: memref<256x256xbf16, #tpu.memory_space<vmem>>, %arg6: memref<1x256xf32, #tpu.memory_space<vmem>>) attributes {dimension_semantics = [#tpu.dimension_semantics<parallel>, #tpu.dimension_semantics<arbitrary>], iteration_bounds = array<i64: 1, 1>, scalar_prefetch = 0 : i64, scratch_operands = 0 : i64, tpu.core_type = #tpu.core_type<tc>, window_params = [{transform_indices = @transform_0, window_bounds = array<i64: 1>}, {transform_indices = @transform_1, window_bounds = array<i64: 2, 256>}, {transform_indices = @transform_2, window_bounds = array<i64: 256, 256>}, {transform_indices = @transform_3, window_bounds = array<i64: 256, 256>}, {transform_indices = @transform_4, window_bounds = array<i64: 1, 256>}]} {
    %c0_i32 = arith.constant 0 : i32
    %0 = arith.cmpi eq, %arg1, %c0_i32 : i32
    %1 = arith.extui %0 : i1 to i32
    %c0_i32_0 = arith.constant 0 : i32
    %2 = arith.cmpi ne, %1, %c0_i32_0 : i32
    scf.if %2 {
      %cst_11 = arith.constant 0.000000e+00 : f32
      %15 = vector.broadcast %cst_11 : f32 to vector<1x256xf32>
      %c0_12 = arith.constant 0 : index
      %16 = memref.load %arg2[%c0_12] : memref<1xf32, #tpu.memory_space<smem>>
      %17 = vector.broadcast %16 : f32 to vector<1x256xf32>
      %18 = arith.addf %15, %17 : vector<1x256xf32>
      %c0_13 = arith.constant 0 : index
      %c0_14 = arith.constant 0 : index
      %19 = vector.load %arg6[%c0_13, %c0_14] : memref<1x256xf32, #tpu.memory_space<vmem>>, vector<1x256xf32>
      tpu.vector_store %arg6[%c0_13, %c0_14], %18 {strides = array<i32>} : memref<1x256xf32, #tpu.memory_space<vmem>>, vector<1x256xf32>,
    } else {
    }
    %c0 = arith.constant 0 : index
    %c0_1 = arith.constant 0 : index
    %3 = vector.load %arg3[%c0, %c0_1] : memref<2x256xf32, #tpu.memory_space<vmem>>, vector<2x256xf32>
    %4 = arith.truncf %3 : vector<2x256xf32> to vector<2x256xbf16>
    %c0_2 = arith.constant 0 : index
    %c0_3 = arith.constant 0 : index
    %5 = vector.load %arg6[%c0_2, %c0_3] : memref<1x256xf32, #tpu.memory_space<vmem>>, vector<1x256xf32>
    %6 = vector.extract_strided_slice %4 {offsets = [0, 0], sizes = [1, 256], strides = [1, 1]} : vector<2x256xbf16> to vector<1x256xbf16>
    %c0_4 = arith.constant 0 : index
    %c0_5 = arith.constant 0 : index
    %7 = vector.load %arg4[%c0_4, %c0_5] : memref<256x256xbf16, #tpu.memory_space<vmem>>, vector<256x256xbf16>
    %cst = arith.constant dense<0.000000e+00> : vector<1x256xf32>
    %8 = tpu.matmul %6, %7, %cst {dimension_numbers = #tpu.dot_dimension_numbers<[1], [0], [0], [1], [0, 0, 1, 1], [], []>} : vector<1x256xbf16>, vector<256x256xbf16>, vector<1x256xf32> -> vector<1x256xf32>
    %9 = vector.extract_strided_slice %4 {offsets = [1, 0], sizes = [1, 256], strides = [1, 1]} : vector<2x256xbf16> to vector<1x256xbf16>
    %c0_6 = arith.constant 0 : index
    %c0_7 = arith.constant 0 : index
    %10 = vector.load %arg5[%c0_6, %c0_7] : memref<256x256xbf16, #tpu.memory_space<vmem>>, vector<256x256xbf16>
    %cst_8 = arith.constant dense<0.000000e+00> : vector<1x256xf32>
    %11 = tpu.matmul %9, %10, %cst_8 {dimension_numbers = #tpu.dot_dimension_numbers<[1], [0], [0], [1], [0, 0, 1, 1], [], []>} : vector<1x256xbf16>, vector<256x256xbf16>, vector<1x256xf32> -> vector<1x256xf32>
    %12 = arith.addf %8, %11 : vector<1x256xf32>
    %13 = arith.addf %5, %12 : vector<1x256xf32>
    %c0_9 = arith.constant 0 : index
    %c0_10 = arith.constant 0 : index
    %14 = vector.load %arg6[%c0_9, %c0_10] : memref<1x256xf32, #tpu.memory_space<vmem>>, vector<1x256xf32>
    tpu.vector_store %arg6[%c0_9, %c0_10], %13 {strides = array<i32>} : memref<1x256xf32, #tpu.memory_space<vmem>>, vector<1x256xf32>,
    return
  }
  func.func @transform_0(%arg0: i32, %arg1: i32) -> i32 {
    %c0_i32 = arith.constant 0 : i32
    %c0_i32_0 = arith.constant 0 : i32
    return %c0_i32 : i32
  }
  func.func @transform_1(%arg0: i32, %arg1: i32) -> (i32, i32) {
    %c0_i32 = arith.constant 0 : i32
    %c0_i32_0 = arith.constant 0 : i32
    return %c0_i32, %arg1 : i32, i32
  }
  func.func @transform_2(%arg0: i32, %arg1: i32) -> (i32, i32) {
    %c0_i32 = arith.constant 0 : i32
    return %arg1, %arg0 : i32, i32
  }
  func.func @transform_3(%arg0: i32, %arg1: i32) -> (i32, i32) {
    %c0_i32 = arith.constant 0 : i32
    return %arg1, %arg0 : i32, i32
  }
  func.func @transform_4(%arg0: i32, %arg1: i32) -> (i32, i32) {
    %c0_i32 = arith.constant 0 : i32
    %c0_i32_0 = arith.constant 0 : i32
    return %c0_i32, %arg0 : i32, i32
  }
}

</mosaic_0001>

<bundles_post_ra>
// kernel: tpu_custom_call.1
= control target key start
LH: loop header
LB: loop body
LE: loop exit
PB: predicated region body
PF: predicated region fallthrough
CT: control target
= control target key end

     0   :  { %10 = vsyncpa [#allocation4], 0  ;;  %s960_s0 = inlined_call_operand.<no memory space> [shape: f32[1], index: 0, kind: input, shape index: {}]   ;;  %s961_s1 = inlined_call_operand.hbm [shape: f32[2,256], index: 1, kind: input, shape index: {}]   ;;  %s962_s2 = inlined_call_operand.hbm [shape: bf16[256,256], index: 2, kind: input, shape index: {}]   ;;  %s963_s3 = inlined_call_operand.hbm [shape: bf16[256,256], index: 3, kind: input, shape index: {}]   ;;  %s964_s4 = inlined_call_operand.hbm [shape: f32[1,256], index: 4, kind: output, shape index: {}]  }
   0x1   :  { %11 = vsyncpa [#allocation7], 0 }
   0x2   :  { %12 = vsyncpa [#allocation5], 0  ;;  %s863_s15 = smov [#allocation6]   ;;  %s769_s19 = scalar_lea.hbm %s962_s2, 4096 }
   0x3   :  { %s30_s16 = sshll.u32 %s863_s15, 4  ;;  %p770_p0 = scmp.ne.s32.totalorder %s962_s2, %s769_s19  ;;  %s31_s16 = int_to_ptr.vmem [resolvable:$true] %s30_s16 }
   0x4   :  { %p773_p1 = scmp.lt.u32.totalorder %s769_s19, %s962_s2 }
   0x6   :  { %p775_p2 = pnand %p773_p1, %p770_p0 }
   0x8   :  { %778 = shalt.err (!%p775_p2)
}
   0x9   :  { %s779_s24 = scalar_lea.vmem %s31_s16, 4096  ;;  %p784_p4 = scmp.lt.s32.totalorder %s31_s16, %s31_s16 }
   0xa   :  { %p780_p3 = scmp.ne.s32.totalorder %s31_s16, %s779_s24  ;;  %p785_p5 = scmp.lt.s32.totalorder %s779_s24, %s779_s24 }
   0xc   :  { %p786_p6 = por %p785_p5, %p784_p4 }
   0xe   :  { %p787_p7 = pnand %p786_p6, %p780_p3 }
  0x10   :  { %790 = shalt.err (!%p787_p7)
}
  0x11   :  { %s864_s25 = smov 128   ;;  %s865_s26 = smov 8  }
  0x12   :  { %36 = dma.hbm_to_vmem [thread:$0]  %s962_s2, 4096, %s31_s16, [#allocation7], %s864_s25, %s864_s25, %s865_s26  }
  0x13   :  { %s866_s29 = smov [#allocation3]   ;;  %s867_s5 = smov [#allocation8]  }
  0x14   :  { %s21_s30 = sshll.u32 %s866_s29, 4  ;;  %s42_s6 = sshll.u32 %s867_s5, 4  ;;  %s22_s30 = int_to_ptr.vmem [resolvable:$true] %s21_s30  ;;  %s43_s6 = int_to_ptr.vmem [resolvable:$true] %s42_s6 }
  0x15   :  { %s791_s9 = scalar_lea.hbm %s961_s1, 64 }
  0x16   :  { %p792_p8 = scmp.ne.s32.totalorder %s961_s1, %s791_s9  ;;  %p795_p9 = scmp.lt.u32.totalorder %s791_s9, %s961_s1 }
  0x18   :  { %p797_p10 = pnand %p795_p9, %p792_p8 }
  0x1a   :  { %800 = shalt.err (!%p797_p10)
}
  0x1b   :  { %s801_s2 = scalar_lea.vmem %s22_s30, 64  ;;  %p806_p12 = scmp.lt.s32.totalorder %s22_s30, %s22_s30 }
  0x1c   :  { %p802_p11 = scmp.ne.s32.totalorder %s22_s30, %s801_s2  ;;  %p807_p13 = scmp.lt.s32.totalorder %s801_s2, %s801_s2 }
  0x1e   :  { %p808_p0 = por %p807_p13, %p806_p12 }
  0x20   :  { %p809_p1 = pnand %p808_p0, %p802_p11 }
  0x22   :  { %812 = shalt.err (!%p809_p1)
}
  0x23   :  { %24 = dma.hbm_to_vmem [thread:$0]  %s961_s1, 64, %s22_s30, [#allocation4]  }
  0x24   :  { %s813_s18 = scalar_lea.hbm %s963_s3, 4096 }
  0x25   :  { %p814_p2 = scmp.ne.s32.totalorder %s963_s3, %s813_s18  ;;  %p817_p3 = scmp.lt.u32.totalorder %s813_s18, %s963_s3 }
  0x27   :  { %p819_p4 = pnand %p817_p3, %p814_p2 }
  0x29   :  { %822 = shalt.err (!%p819_p4)
}
  0x2a   :  { %s823_s23 = scalar_lea.vmem %s43_s6, 4096  ;;  %p828_p6 = scmp.lt.s32.totalorder %s43_s6, %s43_s6 }
  0x2b   :  { %p824_p5 = scmp.ne.s32.totalorder %s43_s6, %s823_s23  ;;  %p829_p7 = scmp.lt.s32.totalorder %s823_s23, %s823_s23 }
  0x2d   :  { %p830_p8 = por %p829_p7, %p828_p6 }
  0x2f   :  { %p831_p9 = pnand %p830_p8, %p824_p5 }
  0x31   :  { %834 = shalt.err (!%p831_p9)
}
  0x32   :  { %48 = dma.hbm_to_vmem [thread:$0]  %s963_s3, 4096, %s43_s6, [#allocation7], %s864_s25, %s864_s25, %s865_s26  }
  0x33   :  { %857 = dma.done.wait [#allocation4], 64  }
  0x34   :  { %858 = vsyncadd [#allocation4], 4294967232 }
  0x35   :  { %859 = dma.done.wait [#allocation7], 8192  }
  0x36   :  { %860 = vsyncadd [#allocation7], 4294959104  ;;  %v673_v0 = vld [vmem:[#allocation8 + $0x4] ss:$8 sps:$4 sm:$0xff]   ;;  %v677_v2 = vld [vmem:[#allocation8] ss:$8 sps:$4 sm:$0xff]  }
  0x37   :  { %v675_v1 = vld [vmem:[#allocation6 + $0x4] ss:$8 sps:$4 sm:$0xff]   ;;  %317 = vmatprep.subr.bf16.mxu1 %v673_v0  ;;  %v678_v3 = vld [vmem:[#allocation6] ss:$8 sps:$4 sm:$0xff]   ;;  %v679_v4 = vld [vmem:[#allocation8 + $0x14] ss:$8 sps:$4 sm:$0xff]  }
  0x38   :  { %518 = vmatprep.subr.bf16.mxu0 %v675_v1  ;;  %318 = vmatpush1.bf16.msra.mxu1 %v677_v2  ;;  %v681_v5 = vld [vmem:[#allocation6 + $0x14] ss:$8 sps:$4 sm:$0xff]   ;;  %v683_v6 = vld [vmem:[#allocation8 + $0x10] ss:$8 sps:$4 sm:$0xff]   ;;  %v685_v8 = vld [vmem:[#allocation8 + $0x24] ss:$8 sps:$4 sm:$0xff]  }
  0x39   :  { %519 = vmatpush1.bf16.msra.mxu0 %v678_v3  ;;  %319 = vmatprep.subr.bf16.mxu1 %v679_v4  ;;  %v684_v7 = vld [vmem:[#allocation6 + $0x10] ss:$8 sps:$4 sm:$0xff]   ;;  %v687_v9 = vld [vmem:[#allocation6 + $0x24] ss:$8 sps:$4 sm:$0xff]   ;;  %v689_v10 = vld [vmem:[#allocation8 + $0x20] ss:$8 sps:$4 sm:$0xff]  }
  0x3a   :  { %520 = vmatprep.subr.bf16.mxu0 %v681_v5  ;;  %v690_v11 = vld [vmem:[#allocation6 + $0x20] ss:$8 sps:$4 sm:$0xff]   ;;  %v691_v12 = vld [vmem:[#allocation8 + $0x34] ss:$8 sps:$4 sm:$0xff]   ;;  %v695_v14 = vld [vmem:[#allocation8 + $0x30] ss:$8 sps:$4 sm:$0xff]  }
  0x3b   :  { %v693_v13 = vld [vmem:[#allocation6 + $0x34] ss:$8 sps:$4 sm:$0xff]   ;;  %v696_v15 = vld [vmem:[#allocation6 + $0x30] ss:$8 sps:$4 sm:$0xff]   ;;  %v697_v16 = vld [vmem:[#allocation8 + $0x44] ss:$8 sps:$4 sm:$0xff]  }
  0x3c   :  { %320 = vmatpush1.bf16.msra.mxu1 %v683_v6  ;;  %v699_v17 = vld [vmem:[#allocation6 + $0x44] ss:$8 sps:$4 sm:$0xff]   ;;  %v701_v18 = vld [vmem:[#allocation8 + $0x40] ss:$8 sps:$4 sm:$0xff]   ;;  %v703_v20 = vld [vmem:[#allocation8 + $0x54] ss:$8 sps:$4 sm:$0xff]   ;;  %v65_v6 = vlaneseq }
  0x3d   :  { %521 = vmatpush1.bf16.msra.mxu0 %v684_v7  ;;  %321 = vmatprep.subr.bf16.mxu1 %v685_v8  ;;  %v702_v19 = vld [vmem:[#allocation6 + $0x40] ss:$8 sps:$4 sm:$0xff]   ;;  %v705_v21 = vld [vmem:[#allocation6 + $0x54] ss:$8 sps:$4 sm:$0xff]   ;;  %v707_v22 = vld [vmem:[#allocation8 + $0x50] ss:$8 sps:$4 sm:$0xff]   ;;  %v63_v7 = vstv %s960_s0 }
  0x3e   :  { %522 = vmatprep.subr.bf16.mxu0 %v687_v9  ;;  %v708_v23 = vld [vmem:[#allocation6 + $0x50] ss:$8 sps:$4 sm:$0xff]   ;;  %v709_v24 = vld [vmem:[#allocation8 + $0x64] ss:$8 sps:$4 sm:$0xff]   ;;  %v713_v26 = vld [vmem:[#allocation8 + $0x60] ss:$8 sps:$4 sm:$0xff]  }
  0x3f   :  { %v711_v25 = vld [vmem:[#allocation6 + $0x64] ss:$8 sps:$4 sm:$0xff]   ;;  %v714_v27 = vld [vmem:[#allocation6 + $0x60] ss:$8 sps:$4 sm:$0xff]   ;;  %v715_v28 = vld [vmem:[#allocation8 + $0x74] ss:$8 sps:$4 sm:$0xff]  }
  0x40   :  { %322 = vmatpush1.bf16.msra.mxu1 %v689_v10  ;;  %v717_v29 = vld [vmem:[#allocation6 + $0x74] ss:$8 sps:$4 sm:$0xff]   ;;  %v719_v30 = vld [vmem:[#allocation8 + $0x70] ss:$8 sps:$4 sm:$0xff]   ;;  %v721_v32 = vld [vmem:[#allocation8 + $0x84] ss:$8 sps:$4 sm:$0xff]  }
  0x41   :  { %523 = vmatpush1.bf16.msra.mxu0 %v690_v11  ;;  %323 = vmatprep.subr.bf16.mxu1 %v691_v12  ;;  %v720_v31 = vld [vmem:[#allocation6 + $0x70] ss:$8 sps:$4 sm:$0xff]   ;;  %v723_v33 = vld [vmem:[#allocation6 + $0x84] ss:$8 sps:$4 sm:$0xff]   ;;  %v725_v34 = vld [vmem:[#allocation8 + $0x80] ss:$8 sps:$4 sm:$0xff]  }
  0x42   :  { %524 = vmatprep.subr.bf16.mxu0 %v693_v13  ;;  %v726_v35 = vld [vmem:[#allocation6 + $0x80] ss:$8 sps:$4 sm:$0xff]   ;;  %v727_v36 = vld [vmem:[#allocation8 + $0x94] ss:$8 sps:$4 sm:$0xff]   ;;  %v731_v38 = vld [vmem:[#allocation8 + $0x90] ss:$8 sps:$4 sm:$0xff]  }
  0x43   :  { %v729_v37 = vld [vmem:[#allocation6 + $0x94] ss:$8 sps:$4 sm:$0xff]   ;;  %v732_v39 = vld [vmem:[#allocation6 + $0x90] ss:$8 sps:$4 sm:$0xff]   ;;  %v733_v40 = vld [vmem:[#allocation8 + $0xa4] ss:$8 sps:$4 sm:$0xff]  }
  0x44   :  { %324 = vmatpush1.bf16.msra.mxu1 %v695_v14  ;;  %v735_v41 = vld [vmem:[#allocation6 + $0xa4] ss:$8 sps:$4 sm:$0xff]   ;;  %v737_v42 = vld [vmem:[#allocation8 + $0xa0] ss:$8 sps:$4 sm:$0xff]   ;;  %v739_v44 = vld [vmem:[#allocation8 + $0xb4] ss:$8 sps:$4 sm:$0xff]  }
  0x45   :  { %525 = vmatpush1.bf16.msra.mxu0 %v696_v15  ;;  %325 = vmatprep.subr.bf16.mxu1 %v697_v16  ;;  %v738_v43 = vld [vmem:[#allocation6 + $0xa0] ss:$8 sps:$4 sm:$0xff]   ;;  %v741_v45 = vld [vmem:[#allocation6 + $0xb4] ss:$8 sps:$4 sm:$0xff]   ;;  %v743_v47 = vld [vmem:[#allocation8 + $0xb0] ss:$8 sps:$4 sm:$0xff]  }
  0x46   :  { %526 = vmatprep.subr.bf16.mxu0 %v699_v17  ;;  %v599_v46 = vld.sshfl [vmem:[#allocation3] sm:$0x33 pattern:$0x76325410]  ;;  %v744_v48 = vld [vmem:[#allocation6 + $0xb0] ss:$8 sps:$4 sm:$0xff]  }
  0x47   :  { %v79_v49 = vcombine.high %v599_v46, %v599_v46  ;;  %v745_v50 = vld [vmem:[#allocation8 + $0xc4] ss:$8 sps:$4 sm:$0xff]   ;;  %v749_v53 = vld [vmem:[#allocation8 + $0xc0] ss:$8 sps:$4 sm:$0xff]   ;;  %v751_v56 = vld [vmem:[#allocation8 + $0xd4] ss:$8 sps:$4 sm:$0xff]   ;;  %v82_v2 = vpack.c.bf16 %v599_v46, %v599_v46 }
  0x48   :  { %326 = vmatpush1.bf16.msra.mxu1 %v701_v18  ;;  %v747_v51 = vld [vmem:[#allocation6 + $0xc4] ss:$8 sps:$4 sm:$0xff]   ;;  %v750_v54 = vld [vmem:[#allocation6 + $0xc0] ss:$8 sps:$4 sm:$0xff]   ;;  %v753_v57 = vld [vmem:[#allocation6 + $0xd4] ss:$8 sps:$4 sm:$0xff]  }
  0x49   :  { %527 = vmatpush1.bf16.msra.mxu0 %v702_v19  ;;  %327 = vmatprep.subr.bf16.mxu1 %v703_v20  ;;  %v83_v52 = vpack.c.bf16 %v79_v49, %v79_v49  ;;  %v755_v58 = vld [vmem:[#allocation8 + $0xd0] ss:$8 sps:$4 sm:$0xff]   ;;  %v757_v60 = vld [vmem:[#allocation8 + $0xe4] ss:$8 sps:$4 sm:$0xff]   ;;  %v761_v62 = vld [vmem:[#allocation8 + $0xe0] ss:$8 sps:$4 sm:$0xff]  }
  0x4a   :  { %528 = vmatprep.subr.bf16.mxu0 %v705_v21  ;;  %v756_v59 = vld [vmem:[#allocation6 + $0xd0] ss:$8 sps:$4 sm:$0xff]   ;;  %v759_v61 = vld [vmem:[#allocation6 + $0xe4] ss:$8 sps:$4 sm:$0xff]   ;;  %v762_v63 = vld [vmem:[#allocation6 + $0xe0] ss:$8 sps:$4 sm:$0xff]  }
  0x4b   :  { %v153_v55 = vshrl.u32 %v83_v52, 16  ;;  %550 = vmatprep.mubr.bf16.mxu0 %v83_v52  ;;  %v763_v0 = vld [vmem:[#allocation8 + $0xf4] ss:$8 sps:$4 sm:$0xff]   ;;  %v767_v3 = vld [vmem:[#allocation8 + $0xf0] ss:$8 sps:$4 sm:$0xff]   ;;  %v150_v5 = vshrl.u32 %v82_v2, 16 }
  0x4c   :  { %328 = vmatpush1.bf16.msra.mxu1 %v707_v22  ;;  %v765_v1 = vld [vmem:[#allocation6 + $0xf4] ss:$8 sps:$4 sm:$0xff]   ;;  %v768_v4 = vld [vmem:[#allocation6 + $0xf0] ss:$8 sps:$4 sm:$0xff]   ;;  %vm940_vm0 = vcmp.lt.s32.totalorder %v65_v6, 256  ;;  %v566_v12 = vshrl.u32 %v65_v6, 7 }
  0x4d   :  { %529 = vmatpush1.bf16.msra.mxu0 %v708_v23  ;;  %329 = vmatprep.subr.bf16.mxu1 %v709_v24  ;;  %69 = vst.msk [vmem:[#allocation9] sm:$0x3] %vm940_vm0, %v63_v7  ;;  %v868_v9 = vmov 1966171168   ;;  %s869_s0 = smov [#allocation9]  }
  0x4e   :  { %530 = vmatprep.subr.bf16.mxu0 %v711_v25  ;;  %349 = vmatprep.mubr.bf16.mxu1 %v153_v55  ;;  %v563_v10 = vunpack.c.l.s4 %v868_v9  ;;  %s589_s26 = sshll.u32 %s869_s0, 4  ;;  %s590_s26 = int_to_ptr.vmem [resolvable:$true] %s589_s26 }
  0x4f   :  { %s835_s27 = scalar_lea.vmem %s590_s26, 32  ;;  %p840_p11 = scmp.lt.s32.totalorder %s590_s26, %s590_s26 }
  0x50   :  { %330 = vmatpush1.bf16.msra.mxu1 %v713_v26  ;;  %v564_v11 = vunpack.c.0.s8 %v563_v10  ;;  %p836_p10 = scmp.ne.s32.totalorder %s590_s26, %s835_s27  ;;  %p841_p12 = scmp.lt.s32.totalorder %s835_s27, %s835_s27 }
  0x51   :  { %531 = vmatpush1.bf16.msra.mxu0 %v714_v27  ;;  %331 = vmatprep.subr.bf16.mxu1 %v715_v28 }
  0x52   :  { %532 = vmatprep.subr.bf16.mxu0 %v717_v29  ;;  %v567_v19 = vsub.s32 %v564_v11, %v566_v12  ;;  %p842_p13 = por %p841_p12, %p840_p11 }
  0x54   :  { %332 = vmatpush1.bf16.msra.mxu1 %v719_v30  ;;  %v84_v26 = vld [vmem:[#allocation9] sm:$0x3]  ;;  %p843_p0 = pnand %p842_p13, %p836_p10 }
  0x55   :  { %533 = vmatpush1.bf16.msra.mxu0 %v720_v31  ;;  %333 = vmatprep.subr.bf16.mxu1 %v721_v32 }
  0x56   :  { %534 = vmatprep.subr.bf16.mxu0 %v723_v33 }
  0x58   :  { %334 = vmatpush1.bf16.msra.mxu1 %v725_v34 }
  0x59   :  { %535 = vmatpush1.bf16.msra.mxu0 %v726_v35  ;;  %335 = vmatprep.subr.bf16.mxu1 %v727_v36 }
  0x5a   :  { %536 = vmatprep.subr.bf16.mxu0 %v729_v37 }
  0x5c   :  { %336 = vmatpush1.bf16.msra.mxu1 %v731_v38 }
  0x5d   :  { %537 = vmatpush1.bf16.msra.mxu0 %v732_v39  ;;  %337 = vmatprep.subr.bf16.mxu1 %v733_v40 }
  0x5e   :  { %538 = vmatprep.subr.bf16.mxu0 %v735_v41 }
  0x60   :  { %338 = vmatpush1.bf16.msra.mxu1 %v737_v42 }
  0x61   :  { %539 = vmatpush1.bf16.msra.mxu0 %v738_v43  ;;  %339 = vmatprep.subr.bf16.mxu1 %v739_v44 }
  0x62   :  { %540 = vmatprep.subr.bf16.mxu0 %v741_v45 }
  0x64   :  { %340 = vmatpush1.bf16.msra.mxu1 %v743_v47 }
  0x65   :  { %541 = vmatpush1.bf16.msra.mxu0 %v744_v48  ;;  %341 = vmatprep.subr.bf16.mxu1 %v745_v50 }
  0x66   :  { %542 = vmatprep.subr.bf16.mxu0 %v747_v51 }
  0x68   :  { %342 = vmatpush1.bf16.msra.mxu1 %v749_v53 }
  0x69   :  { %543 = vmatpush1.bf16.msra.mxu0 %v750_v54  ;;  %343 = vmatprep.subr.bf16.mxu1 %v751_v56 }
  0x6a   :  { %544 = vmatprep.subr.bf16.mxu0 %v753_v57 }
  0x6c   :  { %344 = vmatpush1.bf16.msra.mxu1 %v755_v58 }
  0x6d   :  { %545 = vmatpush1.bf16.msra.mxu0 %v756_v59  ;;  %345 = vmatprep.subr.bf16.mxu1 %v757_v60 }
  0x6e   :  { %546 = vmatprep.subr.bf16.mxu0 %v759_v61 }
  0x70   :  { %346 = vmatpush1.bf16.msra.mxu1 %v761_v62 }
  0x71   :  { %547 = vmatpush1.bf16.msra.mxu0 %v762_v63  ;;  %347 = vmatprep.subr.bf16.mxu1 %v763_v0 }
  0x72   :  { %548 = vmatprep.subr.bf16.mxu0 %v765_v1 }
  0x74   :  { %348 = vmatpush1.bf16.msra.mxu1 %v767_v3 }
  0x75   :  { %549 = vmatpush1.bf16.msra.mxu0 %v768_v4 }
  0x77   :  { %350 = vmatmul.mubr.bf16.vlgmr.msra.gmra.mrb[0].mxu1 %v150_v5 }
  0x78   :  { %551 = vmatmul.mubr.bf16.vlgmr.msra.gmra.mrb[0].mxu0 %v82_v2 }
 0x14a   :  { %v351_v13 = vpop.f32.mrb[0].mxu1 }
 0x14b   :  { %v552_v14 = vpop.f32.mrb[0].mxu0  ;;  %v353_v16 = vpop.f32.mrb[1].mxu1 }
 0x14c   :  { %v553_v15 = vadd.f32 %v552_v14, %v351_v13  ;;  %v554_v17 = vpop.f32.mrb[1].mxu0  ;;  %v355_v20 = vpop.f32.mrb[2].mxu1 }
 0x14d   :  { %v555_v18 = vadd.f32 %v554_v17, %v353_v16  ;;  %v556_v21 = vpop.f32.mrb[2].mxu0  ;;  %v356_v22 = vpop.f32.mrb[3].mxu1 }
 0x14e   :  { %v557_v23 = vpop.f32.mrb[3].mxu0 }
 0x14f   :  { %v561_v24 = vcombine.low %v553_v15, %v555_v18 }
 0x151   :  { %v568_v25 = vrot.slane %v561_v24, %v567_v19 }
 0x153   :  { %v575_v27 = vrot.slane %v568_v25, %v567_v19 }
 0x155   :  { %v577_v28 = vadd.f32 %v575_v27, %v84_v26 }
 0x157   :  { %582 = vst.msk [vmem:[#allocation9] sm:$0x3] %vm940_vm0, %v577_v28 }
 0x158   :  { %846 = shalt.err (!%p843_p0)
}
 0x159   :  { %s847_s30 = scalar_lea.hbm %s964_s4, 32 }
 0x15a   :  { %p848_p1 = scmp.ne.s32.totalorder %s964_s4, %s847_s30  ;;  %p851_p2 = scmp.lt.u32.totalorder %s847_s30, %s964_s4 }
 0x15c   :  { %p853_p3 = pnand %p851_p2, %p848_p1 }
 0x15e   :  { %856 = shalt.err (!%p853_p3)
}
 0x15f   :  { %592 = dma.vmem_to_hbm [thread:$0]  %s590_s26, 32, %s964_s4, [#allocation5]  }
 0x160   :  { %861 = dma.done.wait [#allocation5], 32  }
 0x161   :  { %862 = vsyncadd [#allocation5], 4294967264 }
 0x162   :  { %596 = vsyncpa [#allocation4], 1 }
 0x163   :  { %597 = vsyncpa [#allocation7], 1 }
 0x164   :  { %598 = vsyncpa [#allocation5], 1 }

</bundles_post_ra>
